<compile_context>
chip_gen: v5e
topology: v5e:2x2
jax: 0.10.0
libtpu: 0.0.40
codegen_flags: <defaults>
</compile_context>

<pallas_src>
import functools

import jax
import jax.numpy as jnp
from jax import lax
from jax.experimental import pallas as pl
from jax.experimental.pallas import tpu as pltpu


_NCLS = 128                       # 65 rel-pos classes zero-padded to a full lane width
_VMEM_LIMIT = 48 * 1024 * 1024    # < v7x 64 MiB physical; raises v5e/v6e scoped default


# ----------------------------------------------------------------------------
# helpers
# ----------------------------------------------------------------------------
def _pick_tile(dim, target, multiple=8):
    """Largest tile <= target that divides dim and is a multiple of `multiple`
    (sublane constraint). Falls back to the full dim (full-extent blocks are
    always legal; trades VMEM for correctness on awkward dims)."""
    if dim <= target:
        return dim
    t = (target // multiple) * multiple
    while t >= multiple:
        if dim % t == 0:
            return t
        t -= multiple
    return dim


def _sublane_multiple(*dtypes):
    """bf16/f16 pack two rows per sublane -> prefer 16-row tile granularity."""
    return 16 if any(jnp.dtype(d).itemsize == 2 for d in dtypes) else 8


# ----------------------------------------------------------------------------
# Kernel 1: m[n, l, :] = msa[n, l, :] @ wm_t + sp[l, :]
#           (sp = slinear(seq) + poslinear2(pos1d) + all biases, hoisted)
# ----------------------------------------------------------------------------
def premsa_m_kernel(msa_ref, sp_ref, wm_t_ref, m_out_ref):
    tN = msa_ref.shape[0]
    sp = sp_ref[...]                       # (tL, m_dim) f32, biases folded in
    w = wm_t_ref[...]                      # (msa_dim, m_dim), resident weight
    # Static loop over the small alignment-tile axis: each step is a clean 2-D
    # MXU matmul straight off the ref slice (no leading-dim reshape/relayout).
    for n in range(tN):
        y = jnp.dot(msa_ref[n], w, preferred_element_type=jnp.float32)
        m_out_ref[n] = (y + sp).astype(m_out_ref.dtype)


# ----------------------------------------------------------------------------
# Kernel 2: z[i, j, :] = sk[i, :] + sq[j, :]
#                        + one_hot(clip(j - i, -32, 32) + 32) @ wp_t
#           (sq/sk carry the q/k/pos biases; one-hot built in-kernel, no HBM
#            (L, L, 65) table; off-band tiles skip the matmul entirely)
# ----------------------------------------------------------------------------
def premsa_z_kernel(sk_ref, sq_ref, wp_t_ref, z_out_ref):
    tI, z_dim = sk_ref.shape
    tJ = sq_ref.shape[0]
    ncls = wp_t_ref.shape[0]               # 128 (zero-padded classes)
    i0 = pl.program_id(0) * tI
    j0 = pl.program_id(1) * tJ

    wp = wp_t_ref[...]                                           # (ncls, z_dim) bf16
    base = sk_ref[...][:, None, :] + sq_ref[...][None, :, :]     # (tI, tJ, z_dim) f32

    # Tile-level relative-position bounds (cheap scalars from program_id).
    max_rel = (j0 + tJ - 1) - i0
    min_rel = j0 - (i0 + tI - 1)
    off_band = jnp.logical_or(max_rel <= -32, min_rel >= 32)

    # Fast path: whole tile clips to the same rel class -> positional term is
    # a single broadcast row of wp (row 0 for rel<=-32, row 64 for rel>=32).
    @pl.when(off_band)
    def _():
        row = jnp.where(max_rel <= -32, wp[0:1, :], wp[64:65, :])  # (1, z_dim)
        z_out_ref[...] = (base + row.astype(jnp.float32)[None, :, :]
                          ).astype(z_out_ref.dtype)

    # General path: 2-D rel index + ONE full-size compare against the class
    # iota (exact 0/1 in bf16), then a single bf16 MXU matmul.
    @pl.when(jnp.logical_not(off_band))
    def _():
        ii = lax.broadcasted_iota(jnp.int32, (tI, tJ), 0) + i0
        jj = lax.broadcasted_iota(jnp.int32, (tI, tJ), 1) + j0
        rel = jnp.clip(jj - ii, -32, 32) + 32                      # (tI, tJ)
        cls = lax.broadcasted_iota(jnp.int32, (tI, tJ, ncls), 2)
        oh = (rel[:, :, None] == cls).astype(wp.dtype)             # (tI, tJ, ncls)
        pz = jnp.dot(oh.reshape(tI * tJ, ncls), wp,
                     preferred_element_type=jnp.float32).reshape(tI, tJ, z_dim)
        z_out_ref[...] = (base + pz).astype(z_out_ref.dtype)


# ----------------------------------------------------------------------------
# Wrapper
# ----------------------------------------------------------------------------
def premsa_forward(seq, msa, params, *, out_dtype=jnp.float32,
                   m_tile_n=8, m_tile_l=512, z_tile_i=64, z_tile_j=128,
                   pos_weight_dtype=jnp.bfloat16,
                   vmem_limit_bytes=_VMEM_LIMIT):
    """Pallas implementation of PreMSA.forward. Returns (m, z)."""
    N, L, msa_dim = msa.shape
    m_dim = params["wm"].shape[0]
    z_dim = params["wq"].shape[0]
    f32 = jnp.float32
    assert L < (1 << 14), "pos1d uses a fixed 14-bit positional encoding"

    # Pre-transpose weights once in XLA -> no in-kernel transposes.
    wm_t = params["wm"].T.astype(msa.dtype)                        # (msa_dim, m_dim)
    # Rel-pos weight: bf16 (MXU-friendly, one-hot side is exact) and padded to
    # 128 classes so the in-kernel one-hot matmul has no masked lanes.
    wp_t = jnp.zeros((_NCLS, z_dim), pos_weight_dtype)
    wp_t = wp_t.at[:65].set(params["wp"].T.astype(pos_weight_dtype))

    # Tiny (L, .) pre-computations hoisted out of the heavy kernels; all
    # biases folded in so the kernels only see data + weights.
    d = jnp.arange(L)
    pos1d = ((d[:, None] & (1 << jnp.arange(14))) > 0).astype(f32)          # (L, 14)
    sp = (seq @ params["ws"].T + params["bs"]
          + pos1d @ params["wp2"].T + params["bp2"]
          + params["bm"]).astype(f32)                                       # (L, m_dim)
    sq = (seq @ params["wq"].T + params["bq"] + params["bp"]).astype(f32)   # (L, z_dim)
    sk = (seq @ params["wk"].T + params["bk"]).astype(f32)                  # (L, z_dim)

    cparams = pltpu.CompilerParams(
        dimension_semantics=("parallel", "parallel"),
        vmem_limit_bytes=vmem_limit_bytes)

    # ---- m = msa @ wm_t + sp -------------------------------------------------
    tN = _pick_tile(N, m_tile_n, multiple=1)
    tL = _pick_tile(L, m_tile_l, multiple=_sublane_multiple(msa.dtype, out_dtype))
    m = pl.pallas_call(
        premsa_m_kernel,
        out_shape=jax.ShapeDtypeStruct((N, L, m_dim), out_dtype),
        grid=(N // tN, L // tL),
        in_specs=[
            pl.BlockSpec((tN, tL, msa_dim), lambda n, l: (n, l, 0)),
            pl.BlockSpec((tL, m_dim), lambda n, l: (l, 0)),
            pl.BlockSpec((msa_dim, m_dim), lambda n, l: (0, 0)),   # resident weight
        ],
        out_specs=pl.BlockSpec((tN, tL, m_dim), lambda n, l: (n, l, 0)),
        compiler_params=cparams,
    )(msa, sp, wm_t)

    # ---- z[i, j] = sk[i] + sq[j] + relpos_onehot(i, j) @ wp_t ------------------
    tI = _pick_tile(L, z_tile_i, multiple=8)
    tJ = _pick_tile(L, z_tile_j, multiple=_sublane_multiple(jnp.float32, out_dtype))
    z = pl.pallas_call(
        premsa_z_kernel,
        out_shape=jax.ShapeDtypeStruct((L, L, z_dim), out_dtype),
        grid=(L // tI, L // tJ),
        in_specs=[
            pl.BlockSpec((tI, z_dim), lambda i, j: (i, 0)),
            pl.BlockSpec((tJ, z_dim), lambda i, j: (j, 0)),
            pl.BlockSpec((_NCLS, z_dim), lambda i, j: (0, 0)),     # resident weight
        ],
        out_specs=pl.BlockSpec((tI, tJ, z_dim), lambda i, j: (i, j, 0)),
        compiler_params=cparams,
    )(sk, sq, wp_t)
    # TODO(synk): for z_dim/m_dim < 128, fold the feature dim into lanes in the
    # out_specs (view z as (L, L*z_dim)) to avoid masked partial stores.

    return m, z


# ----------------------------------------------------------------------------
# Pure-JAX reference (matches the PyTorch forward)
# ----------------------------------------------------------------------------
def premsa_reference(seq, msa, params):
    N, L, _ = msa.shape
    d = jnp.arange(L)
    pos1d = ((d[:, None] & (1 << jnp.arange(14))) > 0).astype(jnp.float32)
    rel = jnp.clip(d[None, :] - d[:, None], -32, 32)
    pos2d = jax.nn.one_hot(rel + 32, 65, dtype=jnp.float32)

    lin = lambda x, w, b: x @ w.T + b
    s = lin(seq, params["ws"], params["bs"])
    m = lin(msa, params["wm"], params["bm"])
    p = lin(pos1d, params["wp2"], params["bp2"])
    m = m + s[None, :, :] + p[None, :, :]
    sq = lin(seq, params["wq"], params["bq"])
    sk = lin(seq, params["wk"], params["bk"])
    z = sq[None, :, :] + sk[:, None, :] + lin(pos2d, params["wp"], params["bp"])
    return m, z


def init_params(key, seq_dim, msa_dim, m_dim, z_dim):
    ks = jax.random.split(key, 6)
    def w(k, out_d, in_d):
        return (jax.random.normal(k, (out_d, in_d), jnp.float32)
                / jnp.sqrt(jnp.float32(in_d)))
    return {
        "wm":  w(ks[0], m_dim, msa_dim), "bm":  jnp.full((1, m_dim), 0.01, jnp.float32),
        "ws":  w(ks[1], m_dim, seq_dim), "bs":  jnp.full((1, m_dim), 0.02, jnp.float32),
        "wq":  w(ks[2], z_dim, seq_dim), "bq":  jnp.full((1, z_dim), 0.03, jnp.float32),
        "wk":  w(ks[3], z_dim, seq_dim), "bk":  jnp.full((1, z_dim), 0.04, jnp.float32),
        "wp":  w(ks[4], z_dim, 65),      "bp":  jnp.full((1, z_dim), 0.05, jnp.float32),
        "wp2": w(ks[5], m_dim, 14),      "bp2": jnp.full((1, m_dim), 0.06, jnp.float32),
    }


if __name__ == "__main__":
    key = jax.random.PRNGKey(0)

    def run_case(N, L, seq_dim, msa_dim, m_dim, z_dim,
                 msa_dtype=jnp.float32, out_dtype=jnp.float32,
                 atol=2e-3, rtol=2e-3, **tile_kw):
        k_seq, k_msa, k_par = jax.random.split(jax.random.fold_in(key, L), 3)
        seq = jax.random.normal(k_seq, (L, seq_dim), jnp.float32)
        msa = jax.random.normal(k_msa, (N, L, msa_dim), jnp.float32).astype(msa_dtype)
        params = init_params(k_par, seq_dim, msa_dim, m_dim, z_dim)
        fwd = jax.jit(functools.partial(premsa_forward, params=params,
                                        out_dtype=out_dtype, **tile_kw))
        m, z = fwd(seq, msa)
        jax.block_until_ready((m, z))
        m_ref, z_ref = premsa_reference(seq, msa.astype(jnp.float32), params)
        assert m.shape == (N, L, m_dim) and z.shape == (L, L, z_dim)
        assert jnp.allclose(m.astype(jnp.float32), m_ref, atol=atol, rtol=rtol)
        assert jnp.allclose(z.astype(jnp.float32), z_ref, atol=atol, rtol=rtol)

    # 1) Single-tile case (tiles == full dims).
    run_case(N=4, L=8, seq_dim=16, msa_dim=24, m_dim=32, z_dim=32)
    # 2) Multi-tile case: exercises the (i, j) grid, the in-band one-hot path
    #    AND the off-band fast path (|j0 - i0| reaches well past 32 at L=128).
    run_case(N=4, L=128, seq_dim=16, msa_dim=24, m_dim=32, z_dim=32,
             m_tile_n=2, m_tile_l=32, z_tile_i=16, z_tile_j=16)
    # 3) bf16 streams (bf16 msa input + bf16 outputs) with loosened tolerance.
    run_case(N=4, L=64, seq_dim=16, msa_dim=24, m_dim=32, z_dim=32,
             msa_dtype=jnp.bfloat16, out_dtype=jnp.bfloat16,
             atol=5e-2, rtol=2e-2,
             m_tile_n=2, m_tile_l=32, z_tile_i=16, z_tile_j=16)

    print("KERNEL_OK")
</pallas_src>

<mosaic_0001>
module attributes {stable_mosaic.version = 11 : i64} {
  func.func @premsa_z_kernel(%arg0: i32, %arg1: i32, %arg2: memref<8x32xf32, #tpu.memory_space<vmem>>, %arg3: memref<8x32xf32, #tpu.memory_space<vmem>>, %arg4: memref<128x32xbf16, #tpu.memory_space<vmem>>, %arg5: memref<8x8x32xf32, #tpu.memory_space<vmem>>) attributes {dimension_semantics = [#tpu.dimension_semantics<parallel>, #tpu.dimension_semantics<parallel>], iteration_bounds = array<i64: 1, 1>, scalar_prefetch = 0 : i64, scratch_operands = 0 : i64, tpu.core_type = #tpu.core_type<tc>, window_params = [{transform_indices = @transform_0, window_bounds = array<i64: 8, 32>}, {transform_indices = @transform_1, window_bounds = array<i64: 8, 32>}, {pipeline_mode = #tpu.pipeline_mode<synchronous>, transform_indices = @transform_2, window_bounds = array<i64: 128, 32>}, {transform_indices = @transform_3, window_bounds = array<i64: 8, 8, 32>}]} {
    %c8_i32 = arith.constant 8 : i32
    %0 = arith.muli %arg0, %c8_i32 : i32
    %c8_i32_0 = arith.constant 8 : i32
    %1 = arith.muli %arg1, %c8_i32_0 : i32
    %c0 = arith.constant 0 : index
    %c0_1 = arith.constant 0 : index
    %2 = vector.load %arg4[%c0, %c0_1] : memref<128x32xbf16, #tpu.memory_space<vmem>>, vector<128x32xbf16>
    %c0_2 = arith.constant 0 : index
    %c0_3 = arith.constant 0 : index
    %3 = vector.load %arg2[%c0_2, %c0_3] : memref<8x32xf32, #tpu.memory_space<vmem>>, vector<8x32xf32>
    %4 = vector.shape_cast %3 : vector<8x32xf32> to vector<8x1x32xf32>
    %c0_4 = arith.constant 0 : index
    %c0_5 = arith.constant 0 : index
    %5 = vector.load %arg3[%c0_4, %c0_5] : memref<8x32xf32, #tpu.memory_space<vmem>>, vector<8x32xf32>
    %6 = vector.shape_cast %5 : vector<8x32xf32> to vector<1x8x32xf32>
    %7 = vector.broadcast %4 : vector<8x1x32xf32> to vector<8x8x32xf32>
    %8 = vector.broadcast %6 : vector<1x8x32xf32> to vector<8x8x32xf32>
    %9 = arith.addf %7, %8 : vector<8x8x32xf32>
    %c8_i32_6 = arith.constant 8 : i32
    %10 = arith.addi %1, %c8_i32_6 : i32
    %c1_i32 = arith.constant 1 : i32
    %11 = arith.subi %10, %c1_i32 : i32
    %12 = arith.subi %11, %0 : i32
    %c8_i32_7 = arith.constant 8 : i32
    %13 = arith.addi %0, %c8_i32_7 : i32
    %c1_i32_8 = arith.constant 1 : i32
    %14 = arith.subi %13, %c1_i32_8 : i32
    %15 = arith.subi %1, %14 : i32
    %c-32_i32 = arith.constant -32 : i32
    %16 = arith.cmpi sle, %12, %c-32_i32 : i32
    %c32_i32 = arith.constant 32 : i32
    %17 = arith.cmpi sge, %15, %c32_i32 : i32
    %18 = arith.ori %16, %17 : i1
    %19 = arith.extui %18 : i1 to i32
    %c0_i32 = arith.constant 0 : i32
    %20 = arith.cmpi ne, %19, %c0_i32 : i32
    scf.if %20 {
      %c-32_i32_10 = arith.constant -32 : i32
      %24 = arith.cmpi sle, %12, %c-32_i32_10 : i32
      %25 = vector.extract_strided_slice %2 {offsets = [0, 0], sizes = [1, 32], strides = [1, 1]} : vector<128x32xbf16> to vector<1x32xbf16>
      %26 = vector.extract_strided_slice %2 {offsets = [64, 0], sizes = [1, 32], strides = [1, 1]} : vector<128x32xbf16> to vector<1x32xbf16>
      %27 = arith.select %24, %25, %26 : vector<1x32xbf16>
      %28 = arith.extf %27 : vector<1x32xbf16> to vector<1x32xf32>
      %29 = vector.shape_cast %28 : vector<1x32xf32> to vector<1x1x32xf32>
      %30 = vector.broadcast %29 : vector<1x1x32xf32> to vector<8x8x32xf32>
      %31 = arith.addf %9, %30 : vector<8x8x32xf32>
      %c0_11 = arith.constant 0 : index
      %c0_12 = arith.constant 0 : index
      %c0_13 = arith.constant 0 : index
      %32 = vector.load %arg5[%c0_11, %c0_12, %c0_13] : memref<8x8x32xf32, #tpu.memory_space<vmem>>, vector<8x8x32xf32>
      tpu.vector_store %arg5[%c0_11, %c0_12, %c0_13], %31 {strides = array<i32>} : memref<8x8x32xf32, #tpu.memory_space<vmem>>, vector<8x8x32xf32>,
    } else {
    }
    %true = arith.constant true
    %21 = arith.xori %18, %true : i1
    %22 = arith.extui %21 : i1 to i32
    %c0_i32_9 = arith.constant 0 : i32
    %23 = arith.cmpi ne, %22, %c0_i32_9 : i32
    scf.if %23 {
      %24 = tpu.iota {dimensions = array<i32: 0>} : vector<8x8xi32>
      %25 = vector.broadcast %0 : i32 to vector<8x8xi32>
      %26 = arith.addi %24, %25 : vector<8x8xi32>
      %27 = tpu.iota {dimensions = array<i32: 1>} : vector<8x8xi32>
      %28 = vector.broadcast %1 : i32 to vector<8x8xi32>
      %29 = arith.addi %27, %28 : vector<8x8xi32>
      %30 = arith.subi %29, %26 : vector<8x8xi32>
      %c-32_i32_10 = arith.constant -32 : i32
      %c32_i32_11 = arith.constant 32 : i32
      %31 = vector.broadcast %c-32_i32_10 : i32 to vector<8x8xi32>
      %32 = arith.maxsi %31, %30 : vector<8x8xi32>
      %33 = vector.broadcast %c32_i32_11 : i32 to vector<8x8xi32>
      %34 = arith.minsi %33, %32 : vector<8x8xi32>
      %c32_i32_12 = arith.constant 32 : i32
      %35 = vector.broadcast %c32_i32_12 : i32 to vector<8x8xi32>
      %36 = arith.addi %34, %35 : vector<8x8xi32>
      %37 = tpu.iota {dimensions = array<i32: 2>} : vector<8x8x128xi32>
      %38 = vector.shape_cast %36 : vector<8x8xi32> to vector<8x8x1xi32>
      %39 = vector.broadcast %38 : vector<8x8x1xi32> to vector<8x8x128xi32>
      %40 = arith.cmpi eq, %39, %37 : vector<8x8x128xi32>
      %41 = arith.extui %40 : vector<8x8x128xi1> to vector<8x8x128xi32>
      %42 = arith.sitofp %41 : vector<8x8x128xi32> to vector<8x8x128xf32>
      %43 = arith.truncf %42 : vector<8x8x128xf32> to vector<8x8x128xbf16>
      %44 = vector.shape_cast %43 : vector<8x8x128xbf16> to vector<64x128xbf16>
      %cst = arith.constant dense<0.000000e+00> : vector<64x32xf32>
      %45 = tpu.matmul %44, %2, %cst {dimension_numbers = #tpu.dot_dimension_numbers<[1], [0], [0], [1], [0, 0, 1, 1], [], []>} : vector<64x128xbf16>, vector<128x32xbf16>, vector<64x32xf32> -> vector<64x32xf32>
      %46 = vector.shape_cast %45 : vector<64x32xf32> to vector<8x8x32xf32>
      %47 = arith.addf %9, %46 : vector<8x8x32xf32>
      %c0_13 = arith.constant 0 : index
      %c0_14 = arith.constant 0 : index
      %c0_15 = arith.constant 0 : index
      %48 = vector.load %arg5[%c0_13, %c0_14, %c0_15] : memref<8x8x32xf32, #tpu.memory_space<vmem>>, vector<8x8x32xf32>
      tpu.vector_store %arg5[%c0_13, %c0_14, %c0_15], %47 {strides = array<i32>} : memref<8x8x32xf32, #tpu.memory_space<vmem>>, vector<8x8x32xf32>,
    } else {
    }
    return
  }
  func.func @transform_0(%arg0: i32, %arg1: i32) -> (i32, i32) {
    %c0_i32 = arith.constant 0 : i32
    %c0_i32_0 = arith.constant 0 : i32
    return %arg0, %c0_i32 : i32, i32
  }
  func.func @transform_1(%arg0: i32, %arg1: i32) -> (i32, i32) {
    %c0_i32 = arith.constant 0 : i32
    %c0_i32_0 = arith.constant 0 : i32
    return %arg1, %c0_i32 : i32, i32
  }
  func.func @transform_2(%arg0: i32, %arg1: i32) -> (i32, i32) {
    %c0_i32 = arith.constant 0 : i32
    %c0_i32_0 = arith.constant 0 : i32
    %c0_i32_1 = arith.constant 0 : i32
    return %c0_i32, %c0_i32_0 : i32, i32
  }
  func.func @transform_3(%arg0: i32, %arg1: i32) -> (i32, i32, i32) {
    %c0_i32 = arith.constant 0 : i32
    %c0_i32_0 = arith.constant 0 : i32
    return %arg0, %arg1, %c0_i32 : i32, i32, i32
  }
}

module attributes {stable_mosaic.version = 11 : i64} {
  func.func @premsa_m_kernel(%arg0: i32, %arg1: i32, %arg2: memref<4x8x24xf32, #tpu.memory_space<vmem>>, %arg3: memref<8x32xf32, #tpu.memory_space<vmem>>, %arg4: memref<24x32xf32, #tpu.memory_space<vmem>>, %arg5: memref<4x8x32xf32, #tpu.memory_space<vmem>>) attributes {dimension_semantics = [#tpu.dimension_semantics<parallel>, #tpu.dimension_semantics<parallel>], iteration_bounds = array<i64: 1, 1>, scalar_prefetch = 0 : i64, scratch_operands = 0 : i64, tpu.core_type = #tpu.core_type<tc>, window_params = [{transform_indices = @transform_0, window_bounds = array<i64: 4, 8, 24>}, {transform_indices = @transform_1, window_bounds = array<i64: 8, 32>}, {pipeline_mode = #tpu.pipeline_mode<synchronous>, transform_indices = @transform_2, window_bounds = array<i64: 24, 32>}, {transform_indices = @transform_3, window_bounds = array<i64: 4, 8, 32>}]} {
    %c0 = arith.constant 0 : index
    %c0_0 = arith.constant 0 : index
    %0 = vector.load %arg3[%c0, %c0_0] : memref<8x32xf32, #tpu.memory_space<vmem>>, vector<8x32xf32>
    %c0_1 = arith.constant 0 : index
    %c0_2 = arith.constant 0 : index
    %1 = vector.load %arg4[%c0_1, %c0_2] : memref<24x32xf32, #tpu.memory_space<vmem>>, vector<24x32xf32>
    %c0_3 = arith.constant 0 : index
    %c0_4 = arith.constant 0 : index
    %c0_5 = arith.constant 0 : index
    %2 = vector.load %arg2[%c0_3, %c0_4, %c0_5] : memref<4x8x24xf32, #tpu.memory_space<vmem>>, vector<1x8x24xf32>
    %3 = vector.shape_cast %2 : vector<1x8x24xf32> to vector<8x24xf32>
    %cst = arith.constant dense<0.000000e+00> : vector<8x32xf32>
    %4 = tpu.matmul %3, %1, %cst {dimension_numbers = #tpu.dot_dimension_numbers<[1], [0], [0], [1], [0, 0, 1, 1], [], []>} : vector<8x24xf32>, vector<24x32xf32>, vector<8x32xf32> -> vector<8x32xf32>
    %5 = arith.addf %4, %0 : vector<8x32xf32>
    %c0_6 = arith.constant 0 : index
    %c0_7 = arith.constant 0 : index
    %c0_8 = arith.constant 0 : index
    %6 = vector.load %arg5[%c0_6, %c0_7, %c0_8] : memref<4x8x32xf32, #tpu.memory_space<vmem>>, vector<1x8x32xf32>
    %7 = vector.shape_cast %6 : vector<1x8x32xf32> to vector<8x32xf32>
    %8 = vector.shape_cast %5 : vector<8x32xf32> to vector<1x8x32xf32>
    tpu.vector_store %arg5[%c0_6, %c0_7, %c0_8], %8 {strides = array<i32>} : memref<4x8x32xf32, #tpu.memory_space<vmem>>, vector<1x8x32xf32>,
    %c1 = arith.constant 1 : index
    %c0_9 = arith.constant 0 : index
    %c0_10 = arith.constant 0 : index
    %9 = vector.load %arg2[%c1, %c0_9, %c0_10] : memref<4x8x24xf32, #tpu.memory_space<vmem>>, vector<1x8x24xf32>
    %10 = vector.shape_cast %9 : vector<1x8x24xf32> to vector<8x24xf32>
    %cst_11 = arith.constant dense<0.000000e+00> : vector<8x32xf32>
    %11 = tpu.matmul %10, %1, %cst_11 {dimension_numbers = #tpu.dot_dimension_numbers<[1], [0], [0], [1], [0, 0, 1, 1], [], []>} : vector<8x24xf32>, vector<24x32xf32>, vector<8x32xf32> -> vector<8x32xf32>
    %12 = arith.addf %11, %0 : vector<8x32xf32>
    %c1_12 = arith.constant 1 : index
    %c0_13 = arith.constant 0 : index
    %c0_14 = arith.constant 0 : index
    %13 = vector.load %arg5[%c1_12, %c0_13, %c0_14] : memref<4x8x32xf32, #tpu.memory_space<vmem>>, vector<1x8x32xf32>
    %14 = vector.shape_cast %13 : vector<1x8x32xf32> to vector<8x32xf32>
    %15 = vector.shape_cast %12 : vector<8x32xf32> to vector<1x8x32xf32>
    tpu.vector_store %arg5[%c1_12, %c0_13, %c0_14], %15 {strides = array<i32>} : memref<4x8x32xf32, #tpu.memory_space<vmem>>, vector<1x8x32xf32>,
    %c2 = arith.constant 2 : index
    %c0_15 = arith.constant 0 : index
    %c0_16 = arith.constant 0 : index
    %16 = vector.load %arg2[%c2, %c0_15, %c0_16] : memref<4x8x24xf32, #tpu.memory_space<vmem>>, vector<1x8x24xf32>
    %17 = vector.shape_cast %16 : vector<1x8x24xf32> to vector<8x24xf32>
    %cst_17 = arith.constant dense<0.000000e+00> : vector<8x32xf32>
    %18 = tpu.matmul %17, %1, %cst_17 {dimension_numbers = #tpu.dot_dimension_numbers<[1], [0], [0], [1], [0, 0, 1, 1], [], []>} : vector<8x24xf32>, vector<24x32xf32>, vector<8x32xf32> -> vector<8x32xf32>
    %19 = arith.addf %18, %0 : vector<8x32xf32>
    %c2_18 = arith.constant 2 : index
    %c0_19 = arith.constant 0 : index
    %c0_20 = arith.constant 0 : index
    %20 = vector.load %arg5[%c2_18, %c0_19, %c0_20] : memref<4x8x32xf32, #tpu.memory_space<vmem>>, vector<1x8x32xf32>
    %21 = vector.shape_cast %20 : vector<1x8x32xf32> to vector<8x32xf32>
    %22 = vector.shape_cast %19 : vector<8x32xf32> to vector<1x8x32xf32>
    tpu.vector_store %arg5[%c2_18, %c0_19, %c0_20], %22 {strides = array<i32>} : memref<4x8x32xf32, #tpu.memory_space<vmem>>, vector<1x8x32xf32>,
    %c3 = arith.constant 3 : index
    %c0_21 = arith.constant 0 : index
    %c0_22 = arith.constant 0 : index
    %23 = vector.load %arg2[%c3, %c0_21, %c0_22] : memref<4x8x24xf32, #tpu.memory_space<vmem>>, vector<1x8x24xf32>
    %24 = vector.shape_cast %23 : vector<1x8x24xf32> to vector<8x24xf32>
    %cst_23 = arith.constant dense<0.000000e+00> : vector<8x32xf32>
    %25 = tpu.matmul %24, %1, %cst_23 {dimension_numbers = #tpu.dot_dimension_numbers<[1], [0], [0], [1], [0, 0, 1, 1], [], []>} : vector<8x24xf32>, vector<24x32xf32>, vector<8x32xf32> -> vector<8x32xf32>
    %26 = arith.addf %25, %0 : vector<8x32xf32>
    %c3_24 = arith.constant 3 : index
    %c0_25 = arith.constant 0 : index
    %c0_26 = arith.constant 0 : index
    %27 = vector.load %arg5[%c3_24, %c0_25, %c0_26] : memref<4x8x32xf32, #tpu.memory_space<vmem>>, vector<1x8x32xf32>
    %28 = vector.shape_cast %27 : vector<1x8x32xf32> to vector<8x32xf32>
    %29 = vector.shape_cast %26 : vector<8x32xf32> to vector<1x8x32xf32>
    tpu.vector_store %arg5[%c3_24, %c0_25, %c0_26], %29 {strides = array<i32>} : memref<4x8x32xf32, #tpu.memory_space<vmem>>, vector<1x8x32xf32>,
    return
  }
  func.func @transform_0(%arg0: i32, %arg1: i32) -> (i32, i32, i32) {
    %c0_i32 = arith.constant 0 : i32
    %c0_i32_0 = arith.constant 0 : i32
    return %arg0, %arg1, %c0_i32 : i32, i32, i32
  }
  func.func @transform_1(%arg0: i32, %arg1: i32) -> (i32, i32) {
    %c0_i32 = arith.constant 0 : i32
    %c0_i32_0 = arith.constant 0 : i32
    return %arg1, %c0_i32 : i32, i32
  }
  func.func @transform_2(%arg0: i32, %arg1: i32) -> (i32, i32) {
    %c0_i32 = arith.constant 0 : i32
    %c0_i32_0 = arith.constant 0 : i32
    %c0_i32_1 = arith.constant 0 : i32
    return %c0_i32, %c0_i32_0 : i32, i32
  }
  func.func @transform_3(%arg0: i32, %arg1: i32) -> (i32, i32, i32) {
    %c0_i32 = arith.constant 0 : i32
    %c0_i32_0 = arith.constant 0 : i32
    return %arg0, %arg1, %c0_i32 : i32, i32, i32
  }
}

</mosaic_0001>

<bundles_post_ra>
// kernel: premsa_forward.2
= control target key start
LH: loop header
LB: loop body
LE: loop exit
PB: predicated region body
PF: predicated region fallthrough
CT: control target
= control target key end

     0   :  { %s235_s0 = inlined_call_operand.vmem [shape: f32[4,8,24], index: 0, kind: input, shape index: {}]   ;;  %s236_s1 = inlined_call_operand.vmem [shape: f32[8,32], index: 1, kind: input, shape index: {}]   ;;  %s237_s2 = inlined_call_operand.vmem [shape: f32[24,32], index: 2, kind: input, shape index: {}]   ;;  %s238_s3 = inlined_call_operand.hbm [shape: f32[4,8,32], index: 3, kind: output, shape index: {}]  }
   0x1   :  { %v18_v0 = vld [vmem:[%s237_s2 + $0x10] sm:$0xff]  ;;  %v17_v1 = vld [vmem:[%s237_s2 + $0x8] sm:$0xff]  ;;  %v16_v2 = vld [vmem:[%s237_s2] sm:$0xff] }
   0x2   :  { %91 = vmatpush.msra.mxu2 %v18_v0  ;;  %118 = vmatpush.msra.mxu3 %v18_v0 }
   0x3   :  { %37 = vmatpush.msra.mxu0 %v18_v0  ;;  %64 = vmatpush.msra.mxu1 %v18_v0 }
   0x4   :  { %8 = vsyncpa [#allocation3], 0  ;;  %92 = vmatpush.msra.mxu2 %v17_v1  ;;  %119 = vmatpush.msra.mxu3 %v17_v1  ;;  %vm20_vm0 = vcmask 195584   ;;  %v148_v3 = vld [vmem:[%s235_s0 + $0x10] sm:$0xff]  ;;  %v150_v4 = vld [vmem:[%s235_s0 + $0x18] sm:$0xff]  ;;  %vm44_vm1 = vcmask 261120  }
   0x5   :  { %38 = vmatpush.msra.mxu0 %v17_v1  ;;  %65 = vmatpush.msra.mxu1 %v17_v1  ;;  %v19_v5 = vld [vmem:[%s235_s0] sm:$0xff]  ;;  %v146_v6 = vld [vmem:[%s235_s0 + $0x8] sm:$0xff]  ;;  %s181_s27 = smov [#allocation2]   ;;  %s133_s0 = sshll.u32 %s238_s3, 4  ;;  %s134_s0 = int_to_ptr.hbm [resolvable:$true] %s133_s0 }
   0x6   :  { %93 = vmatpush.msra.mxu2 %v16_v2  ;;  %120 = vmatpush.msra.mxu3 %v16_v2  ;;  %v15_v7 = vld [vmem:[%s236_s1] sm:$0xff]  ;;  %s131_s28 = sshll.u32 %s181_s27, 4  ;;  %s182_s1 = smov 128   ;;  %s132_s28 = int_to_ptr.vmem [resolvable:$true] %s131_s28 }
   0x7   :  { %149 = vmatmul.msk.f32.vlgmr.msra.gmra.mxu2 %vm20_vm0, %v148_v3  ;;  %151 = vmatmul.msk.f32.vlgmr.msra.gmra.mxu3 %vm20_vm0, %v150_v4  ;;  %s183_s4 = smov 8  }
   0x8   :  { %39 = vmatpush.msra.mxu0 %v16_v2  ;;  %66 = vmatpush.msra.mxu1 %v16_v2 }
   0x9   :  { %145 = vmatmul.msk.f32.vlgmr.msra.gmra.mxu0 %vm20_vm0, %v19_v5  ;;  %147 = vmatmul.msk.f32.vlgmr.msra.gmra.mxu1 %vm20_vm0, %v146_v6 }
  0x86   :  { %v41_v8 = vpop.f32.mrf.mxu0  ;;  %v68_v9 = vpop.f32.mrf.mxu1 }
  0x87   :  { %v42_v10 = vadd.f32 %v41_v8, %v15_v7  ;;  %v69_v11 = vadd.f32 %v68_v9, %v15_v7 }
  0x89   :  { %45 = vst.msk [vmem:[#allocation2] sm:$0xff] %vm44_vm1, %v42_v10 }
  0x8a   :  { %72 = vst.msk [vmem:[#allocation2 + $0x8] sm:$0xff] %vm44_vm1, %v69_v11  ;;  %v95_v12 = vpop.f32.mrf.mxu2  ;;  %v122_v13 = vpop.f32.mrf.mxu3 }
  0x8b   :  { %v96_v14 = vadd.f32 %v95_v12, %v15_v7  ;;  %v123_v15 = vadd.f32 %v122_v13, %v15_v7 }
  0x8d   :  { %99 = vst.msk [vmem:[#allocation2 + $0x10] sm:$0xff] %vm44_vm1, %v96_v14 }
  0x8e   :  { %126 = vst.msk [vmem:[#allocation2 + $0x18] sm:$0xff] %vm44_vm1, %v123_v15 }
  0x8f   :  { %139 = dma.vmem_to_hbm [thread:$0]  %s132_s28, 512, %s134_s0, [#allocation3], %s182_s1, %s182_s1, %s183_s4  }
  0x90   :  { %179 = dma.done.wait [#allocation3], 512  }
  0x91   :  { %180 = vsyncadd [#allocation3], 4294966784 }
  0x92   :  { %144 = vsyncpa [#allocation3], 1 }

// kernel: premsa_forward.3
= control target key start
LH: loop header
LB: loop body
LE: loop exit
PB: predicated region body
PF: predicated region fallthrough
CT: control target
= control target key end

     0   :  { %8 = vsyncpa [#allocation3], 0  ;;  %s550_s0 = inlined_call_operand.vmem [shape: f32[8,32], index: 0, kind: input, shape index: {}]   ;;  %s551_s1 = inlined_call_operand.vmem [shape: f32[8,32], index: 1, kind: input, shape index: {}]   ;;  %s552_s2 = inlined_call_operand.hbm [shape: bf16[128,32], index: 2, kind: input, shape index: {}]   ;;  %s553_s3 = inlined_call_operand.hbm [shape: f32[8,8,32], index: 3, kind: output, shape index: {}]  }
   0x1   :  { %9 = vsyncpa [#allocation4], 0  ;;  %s18_s14 = sshll.u32 %s552_s2, 4  ;;  %s492_s15 = smov [#allocation2]   ;;  %v119_v0 = vlaneseq  ;;  %s19_s14 = int_to_ptr.hbm [resolvable:$true] %s18_s14 }
   0x2   :  { %s20_s16 = sshll.u32 %s492_s15, 4  ;;  %s493_s17 = smov 64   ;;  %s21_s16 = int_to_ptr.vmem [resolvable:$true] %s20_s16 }
   0x3   :  { %s494_s18 = smov 4  }
   0x4   :  { %26 = dma.hbm_to_vmem [thread:$0]  %s19_s14, 1024, %s21_s16, [#allocation3], %s493_s17, %s493_s17, %s494_s18  }
   0x5   :  { %488 = dma.done.wait [#allocation3], 1024  }
   0x6   :  { %489 = vsyncadd [#allocation3], 4294966272  ;;  %v120_v1 = vshrl.u32 %v119_v0, 7  ;;  %v522_v2 = vand.u32 127, %v119_v0  ;;  %v405_v5 = vld [vmem:[#allocation2 + $0x38] sm:$0xff]  ;;  %v404_v7 = vld [vmem:[#allocation2 + $0x30] sm:$0xff] }
   0x7   :  { %293 = vmatpush.bf16.msra.mxu0 %v405_v5  ;;  %407 = vmatpush.bf16.msra.mxu2 %v405_v5  ;;  %v403_v11 = vld [vmem:[#allocation2 + $0x28] sm:$0xff]  ;;  %v402_v15 = vld [vmem:[#allocation2 + $0x20] sm:$0xff]  ;;  %v401_v18 = vld [vmem:[#allocation2 + $0x18] sm:$0xff]  ;;  %v495_v23 = vmov 0.0   ;;  %vm330_vm9 = vcmask 261120   ;;  %s345_s24 = sshll.u32 %s553_s3, 4  ;;  %s346_s24 = int_to_ptr.hbm [resolvable:$true] %s345_s24 }
   0x8   :  { %438 = vset.pattern.permute.xlu1 %v120_v1  ;;  %v127_v3 = vsub.s32 %v522_v2, %v120_v1  ;;  %437 = vset.pattern.permute.xlu0 %v120_v1  ;;  %v400_v19 = vld [vmem:[#allocation2 + $0x10] sm:$0xff]  ;;  %v399_v20 = vld [vmem:[#allocation2 + $0x8] sm:$0xff]  ;;  %v398_v21 = vld [vmem:[#allocation2] sm:$0xff]  ;;  %s497_s25 = smov 128   ;;  %s498_s26 = smov 8  }
   0x9   :  { %439 = vset.pattern.permute.xlu2 %v120_v1  ;;  %408 = vmatpush.bf16.msra.mxu3 %v405_v5  ;;  %v49_v59 = vld [vmem:[%s550_s0] sm:$0xff]  ;;  %s496_s0 = smov [#allocation5]  }
   0xa   :  { %vm130_vm0 = vcmp.lt.s32.totalorder %v127_v3, 32  ;;  %406 = vmatpush.bf16.msra.mxu1 %v405_v5  ;;  %v59_v60 = vperm.slane %v49_v59, 0  ;;  %v58_v61 = vld [vmem:[%s551_s1] sm:$0xff]  ;;  %v51_v63 = vrot.slane %v49_v59, 1  ;;  %s343_s1 = sshll.u32 %s496_s0, 4  ;;  %s344_s1 = int_to_ptr.vmem [resolvable:$true] %s343_s1 }
   0xb   :  { %v131_v4 = vsel %vm130_vm0, %v127_v3, 32  ;;  %294 = vmatpush.bf16.msra.mxu0 %v404_v7  ;;  %410 = vmatpush.bf16.msra.mxu2 %v404_v7 }
   0xc   :  { %v132_v6 = vadd.s32 32, %v131_v4  ;;  %v75_v62 = vadd.f32 %v59_v60, %v58_v61 }
   0xd   :  { %411 = vmatpush.bf16.msra.mxu3 %v404_v7 }
   0xe   :  { %v175_v8 = vperm.slane %v132_v6, 6  ;;  %v161_v9 = vperm.slane %v132_v6, 4  ;;  %v133_v10 = vperm.slane %v132_v6, 0  ;;  %409 = vmatpush.bf16.msra.mxu1 %v404_v7  ;;  %v182_v12 = vperm.slane %v132_v6, 7 }
   0xf   :  { %v168_v13 = vperm.slane %v132_v6, 5  ;;  %v140_v14 = vperm.slane %v132_v6, 1  ;;  %295 = vmatpush.bf16.msra.mxu0 %v403_v11  ;;  %413 = vmatpush.bf16.msra.mxu2 %v403_v11  ;;  %v154_v16 = vperm.slane %v132_v6, 3  ;;  %v147_v17 = vperm.slane %v132_v6, 2 }
  0x10   :  { %180 = vperm.xlu1 %438, %v175_v8   ;;  %166 = vperm.xlu0 %437, %v161_v9   ;;  %v54_v6 = vrot.slane %v49_v59, 4  ;;  %v56_v7 = vrot.slane %v49_v59, 6  ;;  %v52_v8 = vrot.slane %v49_v59, 2 }
  0x11   :  { %138 = vperm.xlu2 %439, %v133_v10   ;;  %414 = vmatpush.bf16.msra.mxu3 %v403_v11 }
  0x12   :  { %412 = vmatpush.bf16.msra.mxu1 %v403_v11  ;;  %v63_v9 = vperm.slane %v54_v6, 0  ;;  %v65_v10 = vperm.slane %v56_v7, 0  ;;  %v61_v11 = vperm.slane %v52_v8, 0 }
  0x13   :  { %296 = vmatpush.bf16.msra.mxu0 %v402_v15  ;;  %416 = vmatpush.bf16.msra.mxu2 %v402_v15 }
  0x15   :  { %417 = vmatpush.bf16.msra.mxu3 %v402_v15 }
  0x16   :  { %415 = vmatpush.bf16.msra.mxu1 %v402_v15  ;;  %v57_v15 = vrot.slane %v49_v59, 7 }
  0x17   :  { %297 = vmatpush.bf16.msra.mxu0 %v401_v18  ;;  %419 = vmatpush.bf16.msra.mxu2 %v401_v18 }
  0x18   :  { %187 = vperm.xlu1 %438, %v182_v12   ;;  %173 = vperm.xlu0 %437, %v168_v13   ;;  %v79_v12 = vadd.f32 %v63_v9, %v58_v61  ;;  %v81_v13 = vadd.f32 %v65_v10, %v58_v61 }
  0x19   :  { %145 = vperm.xlu2 %439, %v140_v14   ;;  %420 = vmatpush.bf16.msra.mxu3 %v401_v18  ;;  %v55_v14 = vrot.slane %v49_v59, 5 }
  0x1a   :  { %418 = vmatpush.bf16.msra.mxu1 %v401_v18 }
  0x1b   :  { %298 = vmatpush.bf16.msra.mxu0 %v400_v19  ;;  %422 = vmatpush.bf16.msra.mxu2 %v400_v19 }
  0x1d   :  { %423 = vmatpush.bf16.msra.mxu3 %v400_v19 }
  0x1e   :  { %421 = vmatpush.bf16.msra.mxu1 %v400_v19 }
  0x1f   :  { %299 = vmatpush.bf16.msra.mxu0 %v399_v20  ;;  %425 = vmatpush.bf16.msra.mxu2 %v399_v20 }
  0x20   :  { %159 = vperm.xlu1 %438, %v154_v16   ;;  %152 = vperm.xlu0 %437, %v147_v17   ;;  %v77_v16 = vadd.f32 %v61_v11, %v58_v61  ;;  %v53_v17 = vrot.slane %v49_v59, 3 }
  0x21   :  { %426 = vmatpush.bf16.msra.mxu3 %v399_v20 }
  0x22   :  { %424 = vmatpush.bf16.msra.mxu1 %v399_v20 }
  0x23   :  { %300 = vmatpush.bf16.msra.mxu0 %v398_v21  ;;  %428 = vmatpush.bf16.msra.mxu2 %v398_v21 }
  0x25   :  { %429 = vmatpush.bf16.msra.mxu3 %v398_v21 }
  0x26   :  { %427 = vmatpush.bf16.msra.mxu1 %v398_v21 }
  0x6b   :  { %v139_v22 = vpop.permute.xlu2 %138 }
  0x6c   :  { %vm189_vm1 = vcmp.eq.s32.totalorder %v139_v22, %v522_v2  ;;  %v64_v22 = vperm.slane %v55_v14, 0 }
  0x6d   :  { %v358_v24 = vsel %vm189_vm1, 1.0, %v495_v23 }
  0x6e   :  { %v213_v25 = vpack.c.bf16 %v358_v24, %v358_v24 }
  0x70   :  { %v229_v28 = vunpack.c.l.b16 %v213_v25 }
  0x73   :  { %v146_v26 = vpop.permute.xlu2 %145 }
  0x74   :  { %vm190_vm2 = vcmp.eq.s32.totalorder %v146_v26, %v522_v2  ;;  %v62_v26 = vperm.slane %v53_v17, 0 }
  0x75   :  { %v359_v27 = vsel %vm190_vm2, 1.0, %v495_v23 }
  0x76   :  { %v214_v29 = vpack.c.bf16 %v359_v27, %v359_v27  ;;  %v80_v27 = vadd.f32 %v64_v22, %v58_v61 }
  0x78   :  { %v230_v30 = vunpack.c.l.b16 %v214_v29  ;;  %v78_v29 = vadd.f32 %v62_v26, %v58_v61 }
  0x7a   :  { %v237_v31 = vpack.c.b16 %v230_v30, %v229_v28 }
  0x7c   :  { %301 = vmatmul.bf16.vlgmr.msra.gmra.mxu0 %v237_v31 }
  0x82   :  { %v181_v32 = vpop.permute.xlu1 %180  ;;  %v167_v33 = vpop.permute.xlu0 %166 }
  0x83   :  { %vm195_vm3 = vcmp.eq.s32.totalorder %v181_v32, %v522_v2  ;;  %vm193_vm4 = vcmp.eq.s32.totalorder %v167_v33, %v522_v2 }
  0x84   :  { %v364_v34 = vsel %vm195_vm3, 1.0, %v495_v23  ;;  %v362_v35 = vsel %vm193_vm4, 1.0, %v495_v23 }
  0x85   :  { %v219_v38 = vpack.c.bf16 %v364_v34, %v364_v34  ;;  %v217_v39 = vpack.c.bf16 %v362_v35, %v362_v35 }
  0x87   :  { %v235_v44 = vunpack.c.l.b16 %v219_v38  ;;  %v233_v45 = vunpack.c.l.b16 %v217_v39 }
  0x8a   :  { %v188_v36 = vpop.permute.xlu1 %187  ;;  %v174_v37 = vpop.permute.xlu0 %173 }
  0x8b   :  { %vm196_vm5 = vcmp.eq.s32.totalorder %v188_v36, %v522_v2  ;;  %vm194_vm6 = vcmp.eq.s32.totalorder %v174_v37, %v522_v2 }
  0x8c   :  { %v365_v40 = vsel %vm196_vm5, 1.0, %v495_v23  ;;  %v363_v41 = vsel %vm194_vm6, 1.0, %v495_v23 }
  0x8d   :  { %v220_v42 = vpack.c.bf16 %v365_v40, %v365_v40  ;;  %v218_v43 = vpack.c.bf16 %v363_v41, %v363_v41 }
  0x8f   :  { %v236_v46 = vunpack.c.l.b16 %v220_v42  ;;  %v234_v47 = vunpack.c.l.b16 %v218_v43 }
  0x91   :  { %v239_v48 = vpack.c.b16 %v234_v47, %v233_v45  ;;  %v240_v49 = vpack.c.b16 %v236_v46, %v235_v44 }
  0x92   :  { %v160_v50 = vpop.permute.xlu1 %159  ;;  %v153_v51 = vpop.permute.xlu0 %152 }
  0x93   :  { %vm192_vm7 = vcmp.eq.s32.totalorder %v160_v50, %v522_v2  ;;  %vm191_vm8 = vcmp.eq.s32.totalorder %v153_v51, %v522_v2  ;;  %311 = vmatmul.bf16.vlgmr.msra.gmra.mxu2 %v239_v48  ;;  %316 = vmatmul.bf16.vlgmr.msra.gmra.mxu3 %v240_v49  ;;  %v60_v2 = vperm.slane %v51_v63, 0 }
  0x94   :  { %v361_v52 = vsel %vm192_vm7, 1.0, %v495_v23  ;;  %v360_v53 = vsel %vm191_vm8, 1.0, %v495_v23  ;;  %v66_v23 = vperm.slane %v57_v15, 0 }
  0x95   :  { %v216_v54 = vpack.c.bf16 %v361_v52, %v361_v52  ;;  %v215_v55 = vpack.c.bf16 %v360_v53, %v360_v53  ;;  %v76_v3 = vadd.f32 %v60_v2, %v58_v61 }
  0x96   :  { %v82_v28 = vadd.f32 %v66_v23, %v58_v61 }
  0x97   :  { %v232_v56 = vunpack.c.l.b16 %v216_v54  ;;  %v231_v57 = vunpack.c.l.b16 %v215_v55 }
  0x99   :  { %v238_v58 = vpack.c.b16 %v232_v56, %v231_v57 }
  0x9b   :  { %306 = vmatmul.bf16.vlgmr.msra.gmra.mxu1 %v238_v58 }
  0xf9   :  { %v302_v0 = vpop.f32.mrf.mxu0 }
  0xfa   :  { %v322_v1 = vadd.f32 %v302_v0, %v75_v62 }
  0xfc   :  { %331 = vst.msk [vmem:[#allocation5] sm:$0xff] %vm330_vm9, %v322_v1 }
 0x101   :  { %v304_v4 = vpop.f32.mrf.mxu0 }
 0x102   :  { %v323_v5 = vadd.f32 %v304_v4, %v76_v3 }
 0x104   :  { %332 = vst.msk [vmem:[#allocation5 + $0x8] sm:$0xff] %vm330_vm9, %v323_v5 }
 0x116   :  { %v312_v18 = vpop.f32.mrf.mxu2  ;;  %v317_v19 = vpop.f32.mrf.mxu3 }
 0x117   :  { %v326_v20 = vadd.f32 %v312_v18, %v79_v12  ;;  %v328_v21 = vadd.f32 %v317_v19, %v81_v13 }
 0x118   :  { %v307_v24 = vpop.f32.mrf.mxu1 }
 0x119   :  { %335 = vst.msk [vmem:[#allocation5 + $0x20] sm:$0xff] %vm330_vm9, %v326_v20  ;;  %v324_v25 = vadd.f32 %v307_v24, %v77_v16 }
 0x11a   :  { %337 = vst.msk [vmem:[#allocation5 + $0x30] sm:$0xff] %vm330_vm9, %v328_v21 }
 0x11b   :  { %333 = vst.msk [vmem:[#allocation5 + $0x10] sm:$0xff] %vm330_vm9, %v324_v25 }
 0x11e   :  { %v314_v30 = vpop.f32.mrf.mxu2  ;;  %v319_v31 = vpop.f32.mrf.mxu3 }
 0x11f   :  { %v327_v32 = vadd.f32 %v314_v30, %v80_v27  ;;  %v329_v33 = vadd.f32 %v319_v31, %v82_v28 }
 0x120   :  { %v309_v34 = vpop.f32.mrf.mxu1 }
 0x121   :  { %336 = vst.msk [vmem:[#allocation5 + $0x28] sm:$0xff] %vm330_vm9, %v327_v32  ;;  %v325_v35 = vadd.f32 %v309_v34, %v78_v29 }
 0x122   :  { %338 = vst.msk [vmem:[#allocation5 + $0x38] sm:$0xff] %vm330_vm9, %v329_v33 }
 0x123   :  { %334 = vst.msk [vmem:[#allocation5 + $0x18] sm:$0xff] %vm330_vm9, %v325_v35 }
 0x124   :  { %351 = dma.vmem_to_hbm [thread:$0]  %s344_s1, 1024, %s346_s24, [#allocation4], %s497_s25, %s497_s25, %s498_s26  }
 0x125   :  { %490 = dma.done.wait [#allocation4], 1024  }
 0x126   :  { %491 = vsyncadd [#allocation4], 4294966272 }
 0x127   :  { %356 = vsyncpa [#allocation3], 1 }
 0x128   :  { %357 = vsyncpa [#allocation4], 1 }

</bundles_post_ra>
